<compile_context>
chip_gen: v5e
topology: v5e:2x2
jax: 0.10.0
libtpu: 0.0.40
codegen_flags: <defaults>
</compile_context>

<pallas_src>
import functools

import jax
import jax.numpy as jnp
from jax.experimental import pallas as pl
from jax.experimental.pallas import tpu as pltpu

P1 = 1.0   # dropout2 prob (dead-code path in the PyTorch forward)
P2 = 0.6   # dropout1 prob (the one that matters)


def _dropout_kernel(x_ref, bits_ref, o_ref, *, threshold, scale):
    # keep with probability (1 - p): uniform-uint32 >= p * 2^32
    keep = bits_ref[...] >= jnp.uint32(threshold)
    o_ref[...] = jnp.where(
        keep,
        x_ref[...] * jnp.float32(scale),
        jnp.float32(0.0),
    ).astype(o_ref.dtype)


def dropout_pallas(x, key, p=P2):
    """Training-mode inverted dropout as a Pallas TPU kernel."""
    if p <= 0.0:
        return x
    if p >= 1.0:
        # Degenerate case (matches torch.nn.Dropout(p=1) in training: all zeros).
        return jnp.zeros_like(x)

    # Uniform 32-bit random field, same shape as x, generated once in the wrapper.
    bits = jax.random.bits(key, shape=x.shape, dtype=jnp.uint32)

    # Threshold folded at trace time: drop iff bits < p * 2^32.
    threshold = min(int(p * 4294967296.0), 4294967295)
    scale = 1.0 / (1.0 - p)

    out = pl.pallas_call(
        functools.partial(_dropout_kernel, threshold=threshold, scale=scale),
        out_shape=jax.ShapeDtypeStruct(x.shape, x.dtype),
        in_specs=[
            pl.BlockSpec(memory_space=pltpu.MemorySpace.VMEM),  # x (full array)
            pl.BlockSpec(memory_space=pltpu.MemorySpace.VMEM),  # random bits
        ],
        out_specs=pl.BlockSpec(memory_space=pltpu.MemorySpace.VMEM),
    )(x, bits)
    return out


def model_forward(x1, key):
    # x2 = dropout1(x1), p=0.6, training mode
    x2 = dropout_pallas(x1, key, p=P2)
    # TODO(synk): x3 = torch.rand_like(x2); x4 = Dropout(p=1)(x3) are dead code
    # in the PyTorch forward (never returned); skipped intentionally.
    return x2


if __name__ == "__main__":
    key = jax.random.PRNGKey(0)
    k_data, k_drop = jax.random.split(key)
    x1 = jax.random.normal(k_data, (3, 3, 3), dtype=jnp.float32)

    out = model_forward(x1, k_drop)
    out = jax.block_until_ready(out)

    # Sanity checks: same shape/dtype, and every element is either 0 or x/(1-p).
    assert out.shape == x1.shape and out.dtype == x1.dtype
    scaled = x1 / (1.0 - P2)
    ok = jnp.all(jnp.logical_or(out == 0.0, jnp.abs(out - scaled) < 1e-5))
    assert bool(ok), "dropout output is not {0, x/(1-p)}-valued"

    print("KERNEL_OK")
</pallas_src>

<mosaic_0001>
module attributes {stable_mosaic.version = 11 : i64} {
  func.func @_dropout_kernel(%arg0: memref<3x3x3xf32, #tpu.memory_space<vmem>>, %arg1: memref<3x3x3xi32, #tpu.memory_space<vmem>>, %arg2: memref<3x3x3xf32, #tpu.memory_space<vmem>>) attributes {dimension_semantics = [], scalar_prefetch = 0 : i64, scratch_operands = 0 : i64, tpu.core_type = #tpu.core_type<tc>} {
    %c0 = arith.constant 0 : index
    %c0_0 = arith.constant 0 : index
    %c0_1 = arith.constant 0 : index
    %0 = vector.load %arg1[%c0, %c0_0, %c0_1] : memref<3x3x3xi32, #tpu.memory_space<vmem>>, vector<3x3x3xi32>
    %c-1717986919_i32 = arith.constant -1717986919 : i32
    %1 = vector.broadcast %c-1717986919_i32 : i32 to vector<3x3x3xi32>
    %2 = arith.cmpi uge, %0, %1 : vector<3x3x3xi32>
    %c0_2 = arith.constant 0 : index
    %c0_3 = arith.constant 0 : index
    %c0_4 = arith.constant 0 : index
    %3 = vector.load %arg0[%c0_2, %c0_3, %c0_4] : memref<3x3x3xf32, #tpu.memory_space<vmem>>, vector<3x3x3xf32>
    %cst = arith.constant 2.500000e+00 : f32
    %4 = vector.broadcast %cst : f32 to vector<3x3x3xf32>
    %5 = arith.mulf %3, %4 : vector<3x3x3xf32>
    %cst_5 = arith.constant 0.000000e+00 : f32
    %6 = vector.broadcast %cst_5 : f32 to vector<3x3x3xf32>
    %7 = arith.select %2, %5, %6 : vector<3x3x3xi1>, vector<3x3x3xf32>
    %c0_6 = arith.constant 0 : index
    %c0_7 = arith.constant 0 : index
    %c0_8 = arith.constant 0 : index
    %8 = vector.load %arg2[%c0_6, %c0_7, %c0_8] : memref<3x3x3xf32, #tpu.memory_space<vmem>>, vector<3x3x3xf32>
    tpu.vector_store %arg2[%c0_6, %c0_7, %c0_8], %7 {strides = array<i32>} : memref<3x3x3xf32, #tpu.memory_space<vmem>>, vector<3x3x3xf32>,
    return
  }
}

</mosaic_0001>

<bundles_post_ra>
// kernel: tpu_custom_call.1
= control target key start
LH: loop header
LB: loop body
LE: loop exit
PB: predicated region body
PF: predicated region fallthrough
CT: control target
= control target key end

     0   :  { %7 = vsyncpa [#allocation3], 0  ;;  %s216_s0 = inlined_call_operand.hbm [shape: f32[3,3,3], index: 0, kind: input, shape index: {}]   ;;  %s217_s1 = inlined_call_operand.hbm [shape: u32[3,3,3], index: 1, kind: input, shape index: {}]   ;;  %s218_s2 = inlined_call_operand.hbm [shape: f32[3,3,3], index: 2, kind: output, shape index: {}]  }
   0x1   :  { %8 = vsyncpa [#allocation6], 0 }
   0x2   :  { %9 = vsyncpa [#allocation4], 0  ;;  %s14_s11 = sshll.u32 %s216_s0, 4  ;;  %s175_s12 = smov [#allocation2]   ;;  %s15_s11 = int_to_ptr.hbm [resolvable:$true] %s14_s11 }
   0x3   :  { %s16_s13 = sshll.u32 %s175_s12, 4  ;;  %s27_s16 = sshll.u32 %s217_s1, 4  ;;  %s17_s13 = int_to_ptr.vmem [resolvable:$true] %s16_s13  ;;  %s28_s16 = int_to_ptr.hbm [resolvable:$true] %s27_s16 }
   0x4   :  { %s176_s17 = smov 64   ;;  %s177_s18 = smov 4  }
   0x5   :  { %22 = dma.hbm_to_vmem [thread:$0]  %s15_s11, 192, %s17_s13, [#allocation3], %s176_s17, %s176_s17, %s177_s18  }
   0x6   :  { %s178_s19 = smov [#allocation5]  }
   0x7   :  { %s29_s20 = sshll.u32 %s178_s19, 4  ;;  %s30_s20 = int_to_ptr.vmem [resolvable:$true] %s29_s20 }
   0x8   :  { %35 = dma.hbm_to_vmem [thread:$0]  %s28_s16, 192, %s30_s20, [#allocation6], %s176_s17, %s176_s17, %s177_s18  }
   0x9   :  { %169 = dma.done.wait [#allocation3], 192  }
   0xa   :  { %170 = vsyncadd [#allocation3], 4294967104 }
   0xb   :  { %171 = dma.done.wait [#allocation6], 192  }
   0xc   :  { %172 = vsyncadd [#allocation6], 4294967104  ;;  %vm65_vm0 = vcmask 18432   ;;  %v44_v0 = vld [vmem:[#allocation5] sm:$0x7]  ;;  %s75_s21 = sshll.u32 %s218_s2, 4  ;;  %s76_s21 = int_to_ptr.hbm [resolvable:$true] %s75_s21 }
   0xd   :  { %v56_v1 = vld [vmem:[#allocation2] sm:$0x7]  ;;  %v45_v2 = vld [vmem:[#allocation5 + $0x4] sm:$0x7]  ;;  %v89_v3 = vxor.u32 2147483648, %v44_v0  ;;  %s179_s22 = smov [#allocation7]  }
   0xe   :  { %v59_v4 = vmul.f32 2.5, %v56_v1  ;;  %v90_v5 = vxor.u32 2147483648, %v45_v2  ;;  %v57_v6 = vld [vmem:[#allocation2 + $0x4] sm:$0x7]  ;;  %v46_v8 = vld [vmem:[#allocation5 + $0x8] sm:$0x7] }
   0xf   :  { %v60_v7 = vmul.f32 2.5, %v57_v6  ;;  %v58_v9 = vld [vmem:[#allocation2 + $0x8] sm:$0x7]  ;;  %s73_s23 = sshll.u32 %s179_s22, 4  ;;  %vm49_vm1 = vcmp.ge.s32.totalorder %v89_v3, 429496729  ;;  %s74_s23 = int_to_ptr.vmem [resolvable:$true] %s73_s23 }
  0x10   :  { %vm52_vm2 = vcmp.ge.s32.totalorder %v90_v5, 429496729  ;;  %v91_v10 = vxor.u32 2147483648, %v46_v8  ;;  %v61_v11 = vmul.f32 2.5, %v58_v9  ;;  %v62_v12 = vsel %vm49_vm1, %v59_v4, 0.0 }
  0x11   :  { %v63_v13 = vsel %vm52_vm2, %v60_v7, 0.0  ;;  %66 = vst.msk [vmem:[#allocation7] sm:$0x7] %vm65_vm0, %v62_v12 }
  0x12   :  { %vm55_vm3 = vcmp.ge.s32.totalorder %v91_v10, 429496729  ;;  %67 = vst.msk [vmem:[#allocation7 + $0x4] sm:$0x7] %vm65_vm0, %v63_v13 }
  0x13   :  { %v64_v14 = vsel %vm55_vm3, %v61_v11, 0.0 }
  0x14   :  { %68 = vst.msk [vmem:[#allocation7 + $0x8] sm:$0x7] %vm65_vm0, %v64_v14 }
  0x15   :  { %81 = dma.vmem_to_hbm [thread:$0]  %s74_s23, 192, %s76_s21, [#allocation4], %s176_s17, %s176_s17, %s177_s18  }
  0x16   :  { %173 = dma.done.wait [#allocation4], 192  }
  0x17   :  { %174 = vsyncadd [#allocation4], 4294967104 }
  0x18   :  { %86 = vsyncpa [#allocation3], 1 }
  0x19   :  { %87 = vsyncpa [#allocation6], 1 }
  0x1a   :  { %88 = vsyncpa [#allocation4], 1 }

</bundles_post_ra>
